<compile_context>
chip_gen: v5e
topology: v5e:2x2
jax: 0.10.0
libtpu: 0.0.40
codegen_flags: <defaults>
</compile_context>

<pallas_src>
import jax
import jax.numpy as jnp
from jax import lax
from jax.experimental import pallas as pl
from jax.experimental.pallas import tpu as pltpu


def _round_up(x, m):
    return ((x + m - 1) // m) * m


def _sublane_multiple(dtype):
    """Minimum second-minor block multiple for a dtype's native (sublane, 128) packing tile."""
    itemsize = jnp.dtype(dtype).itemsize
    return {4: 8, 2: 16, 1: 32}.get(itemsize, 8)


def _choose_s_tile(s_pad, d_pad, itemsize, sub, target_bytes):
    """Largest sequence tile (multiple of `sub`, dividing s_pad) with <= target_bytes per block."""
    per_row = max(1, d_pad * itemsize)
    ts = (target_bytes // per_row) // sub * sub
    ts = max(sub, min(ts, s_pad))
    while s_pad % ts != 0:
        ts -= sub
    return ts


def _gd_adversary_kernel(flags_ref, tidx_ref, mask_ref, attack_ref, x_ref, out_ref):
    """One (batch, seq-tile) step.

    flags_ref : SMEM (num_s_tiles + 1,) int32. flags[s]==1 iff seq tile s has attacked rows;
                flags[num_s_tiles]==1 iff NO tile is attacked (identity-copy safety flag).
    tidx_ref  : SMEM (num_s_tiles,) int32. Monotone clamped tile index (used by index_maps only).
    mask_ref  : VMEM (ts, 1) int32   -- mask rows on the sublane axis (lane splat over D).
    attack_ref: VMEM (1, ts, D)      -- attack rows, pre-cast to x.dtype.
    x_ref/out : VMEM (1, ts, D)      -- out aliases x in HBM (in-place module semantics).

    Untouched tiles map to the last attacked tile's block index, so this body runs with the
    attacked tile's buffers still resident; it must NOT write out_ref then (the resident buffer
    already holds that attacked tile's result and the skipped HBM tiles already hold x).
    """
    s = pl.program_id(1)

    @pl.when(flags_ref[s] != 0)
    def _attacked():
        mask = mask_ref[...]                                   # (ts, 1)
        out_ref[...] = jnp.where(mask[None] != 0,               # (1, ts, 1) -> lane splat over D
                                 attack_ref[...], x_ref[...])

    # Safety net: if no tile anywhere is attacked, the single clamped output block would be
    # flushed unwritten at the batch transition. Copy x through exactly once per batch sweep.
    @pl.when(jnp.logical_and(s == 0, flags_ref[pl.num_programs(1)] != 0))
    def _identity_copy():
        out_ref[...] = x_ref[...]


def gd_adversary_forward(x, attack, attack_mask, *, s_tile=None, target_tile_bytes=2 << 20):
    """Functional equivalent of GDAdversary.forward (out aliases x -> in-place when donated)."""
    B, S, D = x.shape

    # Generation-step pass-through: x.shape[1] == 1 and attack.shape[1] != 1
    if S == 1 and attack.shape[1] != 1:
        return x

    if attack.shape[0] != 1 or attack_mask.shape[0] != 1:
        raise ValueError("GDAdversary expects attack / attack_mask with leading dim 1")
    if attack.shape[1] < S or attack_mask.shape[1] < S:
        raise ValueError("x sequence length exceeds the attack buffer; pad attack/attack_mask")

    dtype = x.dtype
    itemsize = jnp.dtype(dtype).itemsize
    sub = _sublane_multiple(dtype)

    atk = attack[:, :S, :].astype(dtype)        # pre-cast once; only (1, S, D)
    mask = attack_mask[:, :S]

    # --- dtype-aware tiling + padding so blocks are full sublane/lane tiles --------------------
    d_pad_to = _round_up(D, 128)
    if s_tile is not None:
        if s_tile % sub != 0:
            raise ValueError(f"s_tile={s_tile} must be a multiple of {sub} for dtype {dtype}")
        s_pad_to = _round_up(S, s_tile)
        ts = s_tile
    else:
        s_pad_to = _round_up(S, sub)
        ts = _choose_s_tile(s_pad_to, d_pad_to, itemsize, sub, target_tile_bytes)

    pad_s, pad_d = s_pad_to - S, d_pad_to - D
    if pad_s or pad_d:
        x_p = jnp.pad(x, ((0, 0), (0, pad_s), (0, pad_d)))
        atk_p = jnp.pad(atk, ((0, 0), (0, pad_s), (0, pad_d)))
        mask_p = jnp.pad(mask, ((0, 0), (0, pad_s)))            # padded rows: not attacked
    else:
        x_p, atk_p, mask_p = x, atk, mask

    S_pad, D_pad = s_pad_to, d_pad_to
    num_s_tiles = S_pad // ts
    mask_s = mask_p.reshape(S_pad, 1).astype(jnp.int32)         # S on the sublane axis

    # --- scalar-prefetched schedule --------------------------------------------------------------
    per_tile = jnp.any(mask_p.reshape(num_s_tiles, ts), axis=1)        # attacked tile?
    any_attacked = jnp.any(per_tile)
    flags = jnp.concatenate(
        [per_tile.astype(jnp.int32),
         jnp.logical_not(any_attacked).astype(jnp.int32)[None]])        # trailing safety flag

    tile_ids = jnp.arange(num_s_tiles, dtype=jnp.int32)
    marked = jnp.where(per_tile, tile_ids, jnp.int32(-1))
    run_max = lax.cummax(marked, axis=0)                                 # last attacked tile <= s
    first_attacked = jnp.argmax(per_tile).astype(jnp.int32)              # 0 if none
    tidx = jnp.where(run_max < 0, first_attacked, run_max).astype(jnp.int32)

    kernel = pl.pallas_call(
        _gd_adversary_kernel,
        out_shape=jax.ShapeDtypeStruct((B, S_pad, D_pad), dtype),
        grid_spec=pltpu.PrefetchScalarGridSpec(
            num_scalar_prefetch=2,
            grid=(B, num_s_tiles),
            in_specs=[
                # mask: (ts, 1) block, clamped tile index -> untouched steps reuse the buffer.
                pl.BlockSpec((ts, 1), lambda b, s, flags, tidx: (tidx[s], 0)),
                # attack: (1, ts, D); batch index ignored; clamped index avoids bounce re-DMA.
                pl.BlockSpec((1, ts, D_pad), lambda b, s, flags, tidx: (0, tidx[s], 0)),
                # x: clamped index -> untouched tiles never DMA'd in.
                pl.BlockSpec((1, ts, D_pad), lambda b, s, flags, tidx: (b, tidx[s], 0)),
            ],
            # out: same clamped index -> untouched tiles never written back (HBM already = x,
            # because the output buffer aliases x).
            out_specs=pl.BlockSpec((1, ts, D_pad), lambda b, s, flags, tidx: (b, tidx[s], 0)),
        ),
        # Flat operand order (incl. scalar-prefetch args): (flags, tidx, mask_s, atk_p, x_p)
        # -> alias x_p (index 4) onto output 0 (in-place module semantics; untouched HBM tiles
        #    are correct without any writeback).
        input_output_aliases={4: 0},
        compiler_params=pltpu.CompilerParams(
            # Seq axis must be "arbitrary": the DMA-skip relies on sequential reuse of identical
            # block indices and the out map is non-injective along it. Batch axis is parallel.
            dimension_semantics=("parallel", "arbitrary"),
            vmem_limit_bytes=32 << 20,
        ),
    )
    out = kernel(flags, tidx, mask_s, atk_p, x_p)
    if pad_s or pad_d:
        out = out[:, :S, :D]
    return out


if __name__ == "__main__":
    key = jax.random.PRNGKey(0)
    k_emb, k_idx, k_x = jax.random.split(key, 3)

    B, S, D, V = 2, 64, 128, 256  # batch, seq, hidden dim (lane-dense), embedding-space size

    # Mirrors GDAdversary.__init__: attack rows sampled from an embedding space.
    embedding_space = jax.random.normal(k_emb, (V, D), jnp.float32)
    random_indices = jax.random.randint(k_idx, (1, S), 0, V)
    attack = embedding_space[random_indices]                     # (1, S, D)

    # Non-contiguous attacked positions (tiles 1, 6, 7 at s_tile=8): exercises the monotone
    # clamped-index path, the leading-untouched forward fill, and the gap between attacks.
    attack_mask = jnp.zeros((1, S), dtype=bool)
    attack_mask = attack_mask.at[:, 8:16].set(True).at[:, 48:].set(True)

    x = jax.random.normal(k_x, (B, S, D), jnp.float32)
    ref = jnp.where(attack_mask[:, :, None], attack.astype(x.dtype), x)

    out = jax.block_until_ready(gd_adversary_forward(x, attack, attack_mask, s_tile=8))
    assert out.shape == x.shape and out.dtype == x.dtype
    assert jnp.allclose(out, ref), "Pallas kernel mismatch vs reference (sparse mask)"

    # All-untouched mask: exercises the "no attacked tiles" identity-copy safety path.
    out_empty = jax.block_until_ready(
        gd_adversary_forward(x, attack, jnp.zeros((1, S), dtype=bool), s_tile=8))
    assert jnp.allclose(out_empty, x), "Pallas kernel mismatch vs reference (empty mask)"

    # bf16 path: dtype-aware sequence tile (multiple of 16).
    x_bf16 = x.astype(jnp.bfloat16)
    ref_bf16 = jnp.where(attack_mask[:, :, None], attack.astype(jnp.bfloat16), x_bf16)
    out_bf16 = jax.block_until_ready(
        gd_adversary_forward(x_bf16, attack, attack_mask, s_tile=16))
    assert jnp.array_equal(out_bf16, ref_bf16), "Pallas kernel mismatch vs reference (bf16)"

    # Generation-step pass-through branch (x.shape[1] == 1, attack.shape[1] != 1).
    x_gen = x[:, :1, :]
    out_gen = jax.block_until_ready(gd_adversary_forward(x_gen, attack, attack_mask))
    assert jnp.array_equal(out_gen, x_gen)

    print("KERNEL_OK")
</pallas_src>

<mosaic_0001>
module attributes {stable_mosaic.version = 11 : i64} {
  func.func @_gd_adversary_kernel(%arg0: i32, %arg1: i32, %arg2: memref<9xi32, #tpu.memory_space<smem>>, %arg3: memref<8xi32, #tpu.memory_space<smem>>, %arg4: memref<8x1xi32, #tpu.memory_space<vmem>>, %arg5: memref<1x8x128xf32, #tpu.memory_space<vmem>>, %arg6: memref<1x8x128xf32, #tpu.memory_space<vmem>>, %arg7: memref<1x8x128xf32, #tpu.memory_space<vmem>>) attributes {dimension_semantics = [#tpu.dimension_semantics<parallel>, #tpu.dimension_semantics<arbitrary>], iteration_bounds = array<i64: 2, 8>, scalar_prefetch = 2 : i64, scratch_operands = 0 : i64, tpu.core_type = #tpu.core_type<tc>, window_params = [{transform_indices = @transform_0, window_bounds = array<i64: 8, 1>}, {transform_indices = @transform_1, window_bounds = array<i64: 1, 8, 128>}, {transform_indices = @transform_2, window_bounds = array<i64: 1, 8, 128>}, {transform_indices = @transform_3, window_bounds = array<i64: 1, 8, 128>}]} {
    %0 = arith.index_cast %arg1 : i32 to index
    %1 = memref.load %arg2[%0] : memref<9xi32, #tpu.memory_space<smem>>
    %c0_i32 = arith.constant 0 : i32
    %2 = arith.cmpi ne, %1, %c0_i32 : i32
    %3 = arith.extui %2 : i1 to i32
    %c0_i32_0 = arith.constant 0 : i32
    %4 = arith.cmpi ne, %3, %c0_i32_0 : i32
    scf.if %4 {
      %c0 = arith.constant 0 : index
      %c0_4 = arith.constant 0 : index
      %11 = vector.load %arg4[%c0, %c0_4] : memref<8x1xi32, #tpu.memory_space<vmem>>, vector<8x1xi32>
      %12 = vector.shape_cast %11 : vector<8x1xi32> to vector<1x8x1xi32>
      %c0_i32_5 = arith.constant 0 : i32
      %13 = vector.broadcast %c0_i32_5 : i32 to vector<1x8x1xi32>
      %14 = arith.cmpi ne, %12, %13 : vector<1x8x1xi32>
      %c0_6 = arith.constant 0 : index
      %c0_7 = arith.constant 0 : index
      %c0_8 = arith.constant 0 : index
      %15 = vector.load %arg5[%c0_6, %c0_7, %c0_8] : memref<1x8x128xf32, #tpu.memory_space<vmem>>, vector<1x8x128xf32>
      %c0_9 = arith.constant 0 : index
      %c0_10 = arith.constant 0 : index
      %c0_11 = arith.constant 0 : index
      %16 = vector.load %arg6[%c0_9, %c0_10, %c0_11] : memref<1x8x128xf32, #tpu.memory_space<vmem>>, vector<1x8x128xf32>
      %17 = vector.shape_cast %14 : vector<1x8x1xi1> to vector<1x8x1xi1>
      %18 = vector.broadcast %17 : vector<1x8x1xi1> to vector<1x8x128xi1>
      %19 = arith.select %18, %15, %16 : vector<1x8x128xi1>, vector<1x8x128xf32>
      %c0_12 = arith.constant 0 : index
      %c0_13 = arith.constant 0 : index
      %c0_14 = arith.constant 0 : index
      %20 = vector.load %arg7[%c0_12, %c0_13, %c0_14] : memref<1x8x128xf32, #tpu.memory_space<vmem>>, vector<1x8x128xf32>
      tpu.vector_store %arg7[%c0_12, %c0_13, %c0_14], %19 {strides = array<i32>} : memref<1x8x128xf32, #tpu.memory_space<vmem>>, vector<1x8x128xf32>,
    } else {
    }
    %c0_i32_1 = arith.constant 0 : i32
    %5 = arith.cmpi eq, %arg1, %c0_i32_1 : i32
    %c8 = arith.constant 8 : index
    %6 = memref.load %arg2[%c8] : memref<9xi32, #tpu.memory_space<smem>>
    %c0_i32_2 = arith.constant 0 : i32
    %7 = arith.cmpi ne, %6, %c0_i32_2 : i32
    %8 = arith.andi %5, %7 : i1
    %9 = arith.extui %8 : i1 to i32
    %c0_i32_3 = arith.constant 0 : i32
    %10 = arith.cmpi ne, %9, %c0_i32_3 : i32
    scf.if %10 {
      %c0 = arith.constant 0 : index
      %c0_4 = arith.constant 0 : index
      %c0_5 = arith.constant 0 : index
      %11 = vector.load %arg6[%c0, %c0_4, %c0_5] : memref<1x8x128xf32, #tpu.memory_space<vmem>>, vector<1x8x128xf32>
      %c0_6 = arith.constant 0 : index
      %c0_7 = arith.constant 0 : index
      %c0_8 = arith.constant 0 : index
      %12 = vector.load %arg7[%c0_6, %c0_7, %c0_8] : memref<1x8x128xf32, #tpu.memory_space<vmem>>, vector<1x8x128xf32>
      tpu.vector_store %arg7[%c0_6, %c0_7, %c0_8], %11 {strides = array<i32>} : memref<1x8x128xf32, #tpu.memory_space<vmem>>, vector<1x8x128xf32>,
    } else {
    }
    return
  }
  func.func @transform_0(%arg0: i32, %arg1: i32, %arg2: memref<9xi32, #tpu.memory_space<smem>>, %arg3: memref<8xi32, #tpu.memory_space<smem>>) -> (i32, i32) {
    %0 = arith.index_cast %arg1 : i32 to index
    %1 = memref.load %arg3[%0] : memref<8xi32, #tpu.memory_space<smem>>
    %c0_i32 = arith.constant 0 : i32
    %c0_i32_0 = arith.constant 0 : i32
    return %1, %c0_i32 : i32, i32
  }
  func.func @transform_1(%arg0: i32, %arg1: i32, %arg2: memref<9xi32, #tpu.memory_space<smem>>, %arg3: memref<8xi32, #tpu.memory_space<smem>>) -> (i32, i32, i32) {
    %0 = arith.index_cast %arg1 : i32 to index
    %1 = memref.load %arg3[%0] : memref<8xi32, #tpu.memory_space<smem>>
    %c0_i32 = arith.constant 0 : i32
    %c0_i32_0 = arith.constant 0 : i32
    %c0_i32_1 = arith.constant 0 : i32
    return %c0_i32, %1, %c0_i32_0 : i32, i32, i32
  }
  func.func @transform_2(%arg0: i32, %arg1: i32, %arg2: memref<9xi32, #tpu.memory_space<smem>>, %arg3: memref<8xi32, #tpu.memory_space<smem>>) -> (i32, i32, i32) {
    %0 = arith.index_cast %arg1 : i32 to index
    %1 = memref.load %arg3[%0] : memref<8xi32, #tpu.memory_space<smem>>
    %c0_i32 = arith.constant 0 : i32
    %c0_i32_0 = arith.constant 0 : i32
    return %arg0, %1, %c0_i32 : i32, i32, i32
  }
  func.func @transform_3(%arg0: i32, %arg1: i32, %arg2: memref<9xi32, #tpu.memory_space<smem>>, %arg3: memref<8xi32, #tpu.memory_space<smem>>) -> (i32, i32, i32) {
    %0 = arith.index_cast %arg1 : i32 to index
    %1 = memref.load %arg3[%0] : memref<8xi32, #tpu.memory_space<smem>>
    %c0_i32 = arith.constant 0 : i32
    %c0_i32_0 = arith.constant 0 : i32
    return %arg0, %1, %c0_i32 : i32, i32, i32
  }
}

</mosaic_0001>

<bundles_post_ra>
// kernel: tpu_custom_call.1
= control target key start
LH: loop header
LB: loop body
LE: loop exit
PB: predicated region body
PF: predicated region fallthrough
CT: control target
= control target key end

     0   :  { %s740_s24 = smov [#allocation3]   ;;  %s741_s25 = smov [#allocation4]   ;;  %s997_s0 = inlined_call_operand.vmem [shape: s32[9], index: 0, kind: input, shape index: {}]   ;;  %s998_s2 = inlined_call_operand.vmem [shape: s32[64,1], index: 2, kind: input, shape index: {}]   ;;  %s999_s3 = inlined_call_operand.vmem [shape: f32[1,64,128], index: 3, kind: input, shape index: {}]   ;;  %s1000_s4 = inlined_call_operand.hbm [shape: f32[2,64,128], index: 4, kind: input, shape index: {}, may-alias: {4,5}]   ;;  %s1001_s5 = inlined_call_operand.hbm [shape: f32[2,64,128], index: 5, kind: output, shape index: {}, may-alias: {4,5}]   ;;  %s1002_s1 = inlined_call_operand.vmem [shape: s32[8], index: 1, kind: input, shape index: {}]  }
   0x1   :  { %s11_s20 = sshll.u32 %s997_s0, 4  ;;  %s16_s23 = sshll.u32 %s1002_s1, 4  ;;  %s12_s20 = int_to_ptr.vmem [resolvable:$true] %s11_s20  ;;  %s17_s23 = int_to_ptr.vmem [resolvable:$true] %s16_s23 }
   0x2   :  { %14 = dma.vmem_to_smem %s12_s20, 16, %s740_s24, [#allocation2] }
   0x3   :  { %19 = dma.vmem_to_smem %s17_s23, 16, %s741_s25, [#allocation2] }
   0x4   :  { %686 = dma.done.wait [#allocation2], 32 }
   0x5   :  { %687 = vsyncadd [#allocation2], 4294967264 }
   0x6   :  { %22 = sfence }
   0x7   :  { %23 = vsyncpa [#allocation6], 0 }
   0x8   :  { %25 = vsyncpa [#allocation6 + $0x1], 0 }
   0x9   :  { %26 = vsyncpa [#allocation7], 0 }
   0xa   :  { %28 = vsyncpa [#allocation7 + $0x1], 0  ;;  %s779_s26 = smov 0   ;;  %s781_s0 = smov 0  }
   0xb   :  { %s783_s27 = smov 0   ;;  %s785_s1 = smov 0  }
   0xc   :  { %s787_s28 = smov 0   ;;  %s789_s29 = smov 0  }
   0xd   :  { %s791_s30 = smov 0   ;;  %s793_s6 = smov 0  }
   0xe   :  { %s795_s7 = smov 0   ;;  %s797_s8 = smov 0  }
   0xf   :  { %s799_s9 = smov 0  }
  0x10 LB: > { %1008 = sst [smem:[#allocation15_spill]] %s706_s27  ;;  %s429_s10 = sadd.s32 4294967295, %s738_s9   ;;  %s738_s9 = sphi %s799_s9, %s34_s9   ;;  %s734_s8 = sphi %s797_s8, %s1032_s8   ;;  %s730_s7 = sphi %s795_s7, %s1025_s7   ;;  %s726_s6 = sphi %s793_s6, %s1031_s6   ;;  %s722_s30 = sphi %s791_s30, %s1024_s30   ;;  %s718_s29 = sphi %s789_s29, %s1023_s29   ;;  %s714_s28 = sphi %s787_s28, %s1030_s28   ;;  %s710_s1 = sphi %s785_s1, %s1029_s1   ;;  %s706_s27 = sphi %s783_s27, %s1021_s27   ;;  %s702_s0 = sphi %s781_s0, %s1028_s0   ;;  %s698_s26 = sphi %s779_s26, %s1027_s26  }
  0x11   : > { %1009 = sst [smem:[#allocation16_spill]] %s718_s29  ;;  %s430_s11 = sadd.s32 4294967294, %s738_s9  }
  0x12   : > { %1010 = sst [smem:[#allocation17_spill]] %s730_s7  ;;  %s43_s12 = sadd.s32 1, %s730_s7 }
  0x13   : > { %p44_p0 = scmp.ge.s32.totalorder %s43_s12, 8  ;;  %s46_s13 = sadd.s32 1, %s734_s8 }
  0x14   : > { %s106_s14 = sld [smem:[#allocation4 + %s730_s7]]  ;;  %s113_s15 = sadd.s32 1, %s718_s29 }
  0x15   : > { %s1034_s12 = smov (%p44_p0, %s43_s12), 0  ;;  %s1036_s13 = smov (!%p44_p0, %s46_s13), %s734_s8 }
  0x16   : > { %1011 = sst [smem:[#allocation18_spill]] %s1034_s12  ;;  %p120_p1 = scmp.ne.s32.totalorder %s718_s29, %s714_s28 }
  0x17   : > { %s107_s16 = sld [smem:[#allocation4 + %s1034_s12]]  ;;  %p48_p2 = scmp.ge.s32.totalorder %s1036_s13, 2 }
  0x18   : > { %p126_p3 = scmp.ne.s32.totalorder %s714_s28, %s710_s1  ;;  %p121_p4 = scmp.eq.s32.totalorder %s738_s9, 0 }
  0x19   : > { %p127_p5 = scmp.eq.s32.totalorder %s429_s10, 0  ;;  %s1038_s13 = smov (%p48_p2, %s1036_s13), 0 }
  0x1a   : > { %1012 = sst [smem:[#allocation19_spill]] %s1038_s13  ;;  %s108_s19 = ssub.s32 %s734_s8, %s1038_s13 }
  0x1b   : > { %p848_p6 = por %p127_p5, %p126_p3  ;;  %s136_s18 = sld [smem:[#allocation4 + %s730_s7]] }
  0x1c   : > { %s137_s20 = sld [smem:[#allocation4 + %s1034_s12]]  ;;  %s143_s22 = sadd.s32 1, %s706_s27 }
  0x1d   : > { %s109_s21 = ssub.s32 %s106_s14, %s107_s16  ;;  %p153_p7 = scmp.ne.s32.totalorder %s706_s27, %s702_s0 }
  0x1e   : > { %s110_s23 = sor.u32 %s109_s21, %s108_s19  ;;  %p154_p9 = scmp.eq.s32.totalorder %s429_s10, 15 }
  0x1f   : > { %p111_p8 = scmp.eq.s32.totalorder %s110_s23, 0  ;;  %p159_p10 = scmp.ne.s32.totalorder %s702_s0, %s698_s26 }
  0x20   : > { %p160_p11 = scmp.eq.s32.totalorder %s430_s11, 15  ;;  %p864_p12 = por %p154_p9, %p153_p7 }
  0x21   : > { %s862_s24 = scalar_select %p111_p8, %s718_s29, %s113_s15  }
  0x22   : > { %s139_s25 = ssub.s32 %s136_s18, %s137_s20  ;;  %p868_p13 = por %p160_p11, %p159_p10 }
  0x23   : > { %1014 = sst [smem:[#allocation20_spill]] %s862_s24  ;;  %s140_s14 = sor.u32 %s139_s25, %s108_s19 }
  0x24   : > { %p141_p0 = scmp.eq.s32.totalorder %s140_s14, 0  ;;  %p122_p2 = por %p121_p4, %p120_p1 }
  0x25   : > { %p466_p3 = scmp.lt.s32.totalorder %s738_s9, 16  ;;  %s198_s11 = sand.u32 1, %s718_s29  }
  0x26   : > { %s878_s10 = scalar_select %p141_p0, %s706_s27, %s143_s22  }
  0x27   : > { %s448_s15 = scalar_select %p122_p2, [#allocation4], [#allocation9] }
  0x28   : > { %1017 = sst [smem:[#allocation21_spill]] %s878_s10  ;;  %s433_s20 = sshll.u32 %s198_s11, 3 }
  0x29   : > { %s449_s18 = scalar_select %p122_p2, %s730_s7, 0 }
  0x2a   : > { %s1040_s15 = smov (!%p466_p3, %s448_s15), [#allocation11]  ;;  %p883_p5 = pnand %p466_p3, %p122_p2 }
  0x2b   : > { %s1042_s18 = smov (!%p466_p3, %s449_s18), 0  ;;  %p436_p7 = scmp.ge.s32.totalorder %s738_s9, 1 }
  0x2c   : > { %s203_s21 = sld [smem:[%s1040_s15 + %s1042_s18]]  ;;  %p218_p8 = scmp.lt.s32.totalorder %s738_s9, 17 }
  0x2d   : > { %s434_s23 = sshll.u32 %s734_s8, 3  ;;  %s202_s22 = scalar_lea.vmem [#allocation5], %s433_s20 }
  0x2e   : > { %p890_p9 = pnand %p436_p7, %p218_p8  ;;  %s213_s14 = sshll.u32 %s202_s22, 4  ;;  %s214_s14 = int_to_ptr.vmem [resolvable:$true] %s213_s14 }
  0x2f   : > { %s199_s15 = scalar_lea.sflag [#allocation6], %s198_s11  ;;  %p588_p4 = pneg %p883_p5 }
  0x32   : > { %s207_s13 = sadd.s32 %s434_s23, %s203_s21 }
  0x33   : > { %s435_s12 = sshll.u32 %s207_s13, 3  ;;  %s591_s13 = scalar_lea.hbm %s1000_s4, 128 }
  0x34   : > { %s209_s29 = scalar_lea.hbm %s1000_s4, %s435_s12 }
  0x35   : > { %s211_s10 = sshll.u32 %s209_s29, 4  ;;  %s212_s10 = int_to_ptr.hbm [resolvable:$true] %s211_s10 }
  0x36   : > { %s584_s18 = sshra.s32 %s212_s10, 4  ;;  %s585_s18 = int_to_ptr.hbm [resolvable:$true] %s584_s18 }
  0x37   : > { %s586_s27 = scalar_lea.hbm %s585_s18, 8  ;;  %p592_p0 = scmp.lt.s32.totalorder %s585_s18, %s1000_s4 }
  0x38   : > { %p587_p1 = scmp.ne.s32.totalorder %s585_s18, %s586_s27  ;;  %p593_p2 = scmp.lt.s32.totalorder %s591_s13, %s586_s27 }
  0x3a   : > { %p589_p10 = pnand %p588_p4, %p587_p1  ;;  %p594_p3 = por %p593_p2, %p592_p0 }
  0x3c   : > { %p590_p11 = pneg %p589_p10 }
  0x3e   : > { %p595_p7 = pnand %p594_p3, %p590_p11 }
  0x40   : > { %598 = shalt.err (!%p595_p7)
}
  0x41   : > { %461 = dma.hbm_to_vmem [thread:$0]  (!%p883_p5), %s212_s10, 128, %s214_s14, %s199_s15  }
  0x42   : > { %222 = sbr.rel (%p890_p9) target bundleno = 250 (0xfa), region = 32  ;;  %s224_s29 = sand.u32 (!%p890_p9), 1, %s714_s28  }
  0x43   : > { %s910_s7 = sshll.u32 (!%p890_p9), %s224_s29, 3  ;;  %s225_s12 = scalar_lea.sflag (!%p890_p9), [#allocation6], %s224_s29 }
  0x44   : > { %s228_s24 = scalar_lea.vmem (!%p890_p9), [#allocation5], %s910_s7 }
  0x47   : > { %689 = dma.done.wait (%p848_p6), %s225_s12, 128  }
  0x48   : > { %691 = vsyncadd (%p848_p6), %s225_s12, 4294967168  ;;  %s259_s27 = sand.u32 1, %s702_s0   ;;  %s262_s10 = sld [smem:[#allocation4 + %s722_s30]] }
  0x49   : > { %s438_s11 = sshll.u32 %s259_s27, 3  ;;  %s268_s19 = sld [smem:[#allocation4 + %s722_s30]] }
  0x4a   : > { %s276_s25 = sld [smem:[#allocation3 + %s722_s30]]  ;;  %s929_s23 = scalar_lea.vmem [#allocation8], %s438_s11 }
  0x4e   : > { %p263_p5 = scmp.lt.s32.totalorder %s262_s10, 7 }
  0x4f   : > { %p269_p8 = scmp.lt.s32.totalorder %s268_s19, 7 }
  0x50   : > { %s1044_s10 = smov (!%p263_p5, %s262_s10), 7  ;;  %p441_p6 = scmp.eq.s32.totalorder %s276_s25, 0 }
  0x51   : > { %s1046_s19 = smov (!%p269_p8, %s268_s19), 7  ;;  %s439_s14 = sshll.u32 %s1044_s10, 3 }
  0x52   : > { %s266_s17 = scalar_lea.vmem %s998_s2, %s439_s14  ;;  %s440_s20 = sshll.u32 %s1046_s19, 3 }
  0x53   : > { %s272_s21 = scalar_lea.vmem %s999_s3, %s440_s20  ;;  %280 = sbr.rel (%p441_p6) target bundleno = 209 (0xd1), region = 40 }
  0x58   : > { %v281_v0 = vld [vmem:[%s266_s17] sm:$0xff]  ;;  %v742_v1 = vmov 0  }
  0x59   : > { %559 = vset.pattern.permute.xlu0 %v742_v1  ;;  %vm282_vm0 = vcmp.ne.s32.totalorder %v281_v0, 0  ;;  %v283_v3 = vld [vmem:[%s272_s21] sm:$0xff] }
  0x5a   : > { %v285_v2 = vsel %vm282_vm0, 1, %v742_v1  ;;  %v284_v4 = vld [vmem:[%s228_s24] sm:$0xff] }
  0x5b   : > { %287 = vperm.xlu0 %559, %v285_v2  }
  0xcd   : > { %v288_v5 = vpop.permute.xlu0 %287 }
  0xce   : > { %vm289_vm1 = vcmp.eq.s32.totalorder %v288_v5, 1 }
  0xcf   : > { %v290_v6 = vsel %vm289_vm1, %v283_v3, %v284_v4 }
  0xd0   : > { %291 = vst [vmem:[%s929_s23] sm:$0xff] %v290_v6 }
  0xd1 PF: > { %s442_s29 = sld [smem:[#allocation3 + $0x8]]  ;;  %p292_p9 = scmp.eq.s32.totalorder %s722_s30, 0 }
  0xd7   : > { %p294_p1 = scmp.ne.s32.totalorder %s442_s29, 0 }
  0xd9   : > { %p295_p4 = pnand %p294_p1, %p292_p9 }
  0xdb   : > { %298 = sbr.rel (%p295_p4) target bundleno = 226 (0xe2), region = 44 }
  0xe0   : > { %v299_v7 = vld [vmem:[%s228_s24] sm:$0xff] }
  0xe1   : > { %300 = vst [vmem:[%s929_s23] sm:$0xff] %v299_v7 }
  0xe2 PF: > { %s452_s12 = scalar_select %p864_p12, [#allocation4], [#allocation10] }
  0xe3   : > { %s1048_s30 = smov (!%p864_p12, %s722_s30), 0  ;;  %s444_s11 = sshll.u32 %s726_s6, 3 }
  0xe4   : > { %s309_s10 = sld [smem:[%s452_s12 + %s1048_s30]]  ;;  %s317_s19 = sshll.u32 %s929_s23, 4  ;;  %s318_s19 = int_to_ptr.vmem [resolvable:$true] %s317_s19 }
  0xe5   : > { %s302_s17 = scalar_lea.sflag [#allocation7], %s259_s27  ;;  %s634_s13 = scalar_lea.hbm %s1001_s5, 128 }
  0xea   : > { %s313_s25 = sadd.s32 %s444_s11, %s309_s10 }
  0xeb   : > { %s445_s7 = sshll.u32 %s313_s25, 3 }
  0xec   : > { %s315_s15 = scalar_lea.hbm %s1001_s5, %s445_s7 }
  0xed   : > { %s319_s18 = sshll.u32 %s315_s15, 4  ;;  %s320_s18 = int_to_ptr.hbm [resolvable:$true] %s319_s18 }
  0xee   : > { %s628_s20 = sshra.s32 %s320_s18, 4  ;;  %s629_s20 = int_to_ptr.hbm [resolvable:$true] %s628_s20 }
  0xef   : > { %s630_s22 = scalar_lea.hbm %s629_s20, 8  ;;  %p635_p2 = scmp.lt.s32.totalorder %s629_s20, %s1001_s5 }
  0xf0   : > { %p631_p10 = scmp.ne.s32.totalorder %s629_s20, %s630_s22  ;;  %p636_p3 = scmp.lt.s32.totalorder %s634_s13, %s630_s22 }
  0xf2   : > { %p632_p11 = pnand %p631_p10, %p864_p12  ;;  %p637_p7 = por %p636_p3, %p635_p2 }
  0xf4   : > { %p633_p0 = pneg %p632_p11 }
  0xf6   : > { %p638_p5 = pnand %p637_p7, %p633_p0 }
  0xf8   : > { %641 = shalt.err (!%p638_p5)
}
  0xf9   : > { %454 = dma.vmem_to_hbm [thread:$0]  (%p864_p12), %s318_s19, 128, %s320_s18, %s302_s17  }
  0xfa PF: > { %p467_p8 = scmp.ge.s32.totalorder %s738_s9, 2  ;;  %s331_s27 = sand.u32 1, %s698_s26  }
  0xfb   : > { %s332_s29 = scalar_lea.sflag [#allocation7], %s331_s27 }
  0xfc   : > { %p463_p6 = pnand %p467_p8, %p868_p13 }
  0xfe   : > { %p464_p9 = pneg %p463_p6 }
 0x100   : > { %693 = dma.done.wait (%p464_p9), %s332_s29, 128  }
 0x101   : > { %695 = vsyncadd (%p464_p9), %s332_s29, 4294967168  ;;  %s34_s9 = sadd.s32 1, %s738_s9   ;;  %s1020_s12 = sld [smem:[#allocation15_spill]] }
 0x102   : > { %p31_p1 = scmp.ge.s32.totalorder %s34_s9, 18   ;;  %s1021_s27 = sld [smem:[#allocation21_spill]] }
 0x103   : > { %s1022_s10 = sld [smem:[#allocation16_spill]]  ;;  %s1027_s26 = smov %s702_s0 }
 0x104   : > { %s1023_s29 = sld [smem:[#allocation20_spill]]  ;;  %s1029_s1 = smov %s714_s28 }
 0x105   : > { %s1024_s30 = sld [smem:[#allocation17_spill]]  ;;  %s1031_s6 = smov %s734_s8 }
 0x106   : > { %s1025_s7 = sld [smem:[#allocation18_spill]] }
 0x107   : > { %s1026_s11 = sld [smem:[#allocation19_spill]]  ;;  %s1028_s0 = smov %s1020_s12 }
 0x109   : > { %s1030_s28 = smov %s1022_s10  ;;  %33 = sbr.rel (!%p31_p1) target bundleno = 16 (0x10), region = 91 }
 0x10d   : > { %s1032_s8 = smov %s1026_s11 }
 0x10e   :  { %338 = vsyncpa [#allocation6], 1 }
 0x10f   :  { %340 = vsyncpa [#allocation6 + $0x1], 1 }
 0x110   :  { %341 = vsyncpa [#allocation7], 1 }
 0x111   :  { %343 = vsyncpa [#allocation7 + $0x1], 1 }

</bundles_post_ra>
